<compile_context>
chip_gen: v6e
topology: v6e:2x2x1
jax: 0.10.0
libtpu: 0.0.40
codegen_flags: <defaults>
</compile_context>

<pallas_src>
import functools
import math

import jax
import jax.numpy as jnp
from jax.experimental import pallas as pl
from jax.experimental.pallas import tpu as pltpu


# ------------------------------ helpers ------------------------------

def _fit_tile(dim, target):
    """Largest divisor of `dim` that is <= target (keeps grids exact)."""
    t = min(dim, target)
    while dim % t:
        t -= 1
    return t


# -------------------- tiled dense: o = act(x @ w + b) --------------------

def _dense_kernel(x_ref, w_ref, b_ref, o_ref, acc_ref, *, activation):
    @pl.when(pl.program_id(2) == 0)
    def _init():
        acc_ref[...] = jnp.zeros_like(acc_ref)

    acc_ref[...] += jnp.dot(x_ref[...], w_ref[...],
                            preferred_element_type=jnp.float32)

    @pl.when(pl.program_id(2) == pl.num_programs(2) - 1)
    def _done():
        y = acc_ref[...] + b_ref[...].astype(jnp.float32)
        if activation == "gelu":
            # HF RoBERTa "gelu" is the exact (erf) GELU.
            y = 0.5 * y * (1.0 + jax.lax.erf(y * (1.0 / math.sqrt(2.0))))
        o_ref[...] = y.astype(o_ref.dtype)


def dense(x, w, b, activation=None, *, tm=256, tn=512, tk=512):
    M, K = x.shape
    N = w.shape[1]
    tm, tn, tk = _fit_tile(M, tm), _fit_tile(N, tn), _fit_tile(K, tk)
    return pl.pallas_call(
        functools.partial(_dense_kernel, activation=activation),
        out_shape=jax.ShapeDtypeStruct((M, N), x.dtype),
        grid=(M // tm, N // tn, K // tk),
        in_specs=[
            pl.BlockSpec((tm, tk), lambda i, j, k: (i, k)),
            pl.BlockSpec((tk, tn), lambda i, j, k: (k, j)),
            pl.BlockSpec((1, tn), lambda i, j, k: (0, j)),
        ],
        out_specs=pl.BlockSpec((tm, tn), lambda i, j, k: (i, j)),
        scratch_shapes=[pltpu.VMEM((tm, tn), jnp.float32)],
        compiler_params=pltpu.CompilerParams(
            dimension_semantics=("parallel", "parallel", "arbitrary")),
    )(x, w, b)


# ---- fused: o = LayerNorm(x @ w + b + residual) * gamma + beta  (LN over full row) ----

def _dense_res_ln_kernel(x_ref, w_ref, b_ref, r_ref, g_ref, be_ref, o_ref,
                         acc_ref, *, eps):
    @pl.when(pl.program_id(1) == 0)
    def _init():
        acc_ref[...] = jnp.zeros_like(acc_ref)

    acc_ref[...] += jnp.dot(x_ref[...], w_ref[...],
                            preferred_element_type=jnp.float32)

    @pl.when(pl.program_id(1) == pl.num_programs(1) - 1)
    def _done():
        h = (acc_ref[...] + b_ref[...].astype(jnp.float32)
             + r_ref[...].astype(jnp.float32))
        mu = jnp.mean(h, axis=-1, keepdims=True)
        var = jnp.mean(jnp.square(h - mu), axis=-1, keepdims=True)
        y = (h - mu) * jax.lax.rsqrt(var + eps)
        o_ref[...] = (y * g_ref[...].astype(jnp.float32)
                      + be_ref[...].astype(jnp.float32)).astype(o_ref.dtype)


def dense_residual_layernorm(x, w, b, residual, gamma, beta, eps, *, tm=256, tk=512):
    M, K = x.shape
    N = w.shape[1]                 # LN needs the full output row -> no N tiling (N = H)
    tm, tk = _fit_tile(M, tm), _fit_tile(K, tk)
    return pl.pallas_call(
        functools.partial(_dense_res_ln_kernel, eps=eps),
        out_shape=jax.ShapeDtypeStruct((M, N), residual.dtype),
        grid=(M // tm, K // tk),
        in_specs=[
            pl.BlockSpec((tm, tk), lambda i, k: (i, k)),
            pl.BlockSpec((tk, N), lambda i, k: (k, 0)),
            pl.BlockSpec((1, N), lambda i, k: (0, 0)),
            pl.BlockSpec((tm, N), lambda i, k: (i, 0)),
            pl.BlockSpec((1, N), lambda i, k: (0, 0)),
            pl.BlockSpec((1, N), lambda i, k: (0, 0)),
        ],
        out_specs=pl.BlockSpec((tm, N), lambda i, k: (i, 0)),
        scratch_shapes=[pltpu.VMEM((tm, N), jnp.float32)],
        compiler_params=pltpu.CompilerParams(
            dimension_semantics=("parallel", "arbitrary")),
    )(x, w, b, residual, gamma, beta)


# -------------------- row-tiled LayerNorm (no residual, embeddings) --------------------

def _ln_kernel(x_ref, g_ref, b_ref, o_ref, *, eps):
    h = x_ref[...].astype(jnp.float32)
    mu = jnp.mean(h, axis=-1, keepdims=True)
    var = jnp.mean(jnp.square(h - mu), axis=-1, keepdims=True)
    y = (h - mu) * jax.lax.rsqrt(var + eps)
    o_ref[...] = (y * g_ref[...].astype(jnp.float32)
                  + b_ref[...].astype(jnp.float32)).astype(o_ref.dtype)


def layernorm(x, gamma, beta, eps, out_dtype, *, tm=512):
    M, H = x.shape
    tm = _fit_tile(M, tm)
    return pl.pallas_call(
        functools.partial(_ln_kernel, eps=eps),
        out_shape=jax.ShapeDtypeStruct((M, H), out_dtype),
        grid=(M // tm,),
        in_specs=[pl.BlockSpec((tm, H), lambda i: (i, 0)),
                  pl.BlockSpec((1, H), lambda i: (0, 0)),
                  pl.BlockSpec((1, H), lambda i: (0, 0))],
        out_specs=pl.BlockSpec((tm, H), lambda i: (i, 0)),
        compiler_params=pltpu.CompilerParams(dimension_semantics=("parallel",)),
    )(x, gamma, beta)


# ------------------------------ attention ------------------------------

def _attn_kernel(q_ref, k_ref, v_ref, m_ref, o_ref, *, scale):
    q = q_ref[0, 0]                              # (S, Dh) bf16
    k = k_ref[0, 0]                              # (S, Dh) bf16
    v = v_ref[0, 0]                              # (S, Dh) bf16
    m = m_ref[0, 0].astype(jnp.float32)          # (1, S) additive mask over keys
    # QK^T via dot_general contracting last axes (no explicit transpose).
    s = jax.lax.dot_general(q, k, (((1,), (1,)), ((), ())),
                            preferred_element_type=jnp.float32) * scale + m
    s = s - jnp.max(s, axis=-1, keepdims=True)
    p = jnp.exp(s)
    p = p * pl.reciprocal(jnp.sum(p, axis=-1, keepdims=True), approx=True)
    o_ref[0, 0] = jnp.dot(p.astype(v.dtype), v,
                          preferred_element_type=jnp.float32).astype(o_ref.dtype)


def attention(q, k, v, ext_mask, scale):
    B, NH, S, Dh = q.shape
    qkv_spec = pl.BlockSpec((1, 1, S, Dh), lambda b, h: (b, h, 0, 0))
    return pl.pallas_call(
        functools.partial(_attn_kernel, scale=scale),
        out_shape=jax.ShapeDtypeStruct((B, NH, S, Dh), q.dtype),
        grid=(B, NH),
        in_specs=[qkv_spec, qkv_spec, qkv_spec,
                  pl.BlockSpec((1, 1, 1, S), lambda b, h: (b, 0, 0, 0))],
        out_specs=pl.BlockSpec((1, 1, S, Dh), lambda b, h: (b, h, 0, 0)),
        compiler_params=pltpu.CompilerParams(
            dimension_semantics=("parallel", "parallel")),
    )(q, k, v, ext_mask)


# ------------------------------ classifier head ------------------------------

def _classifier_kernel(x_ref, w1_ref, b1_ref, w2_ref, b2_ref, o_ref):
    h1 = (jnp.dot(x_ref[...], w1_ref[...], preferred_element_type=jnp.float32)
          + b1_ref[...].astype(jnp.float32))
    # Dropout between the two Linear layers: eval-mode identity.
    h1 = h1.astype(w2_ref.dtype)
    o_ref[...] = (jnp.dot(h1, w2_ref[...], preferred_element_type=jnp.float32)
                  + b2_ref[...].astype(jnp.float32)).astype(o_ref.dtype)


def classifier_head(x, w1, b1, w2, b2):
    B = x.shape[0]
    C = w2.shape[1]
    return pl.pallas_call(
        _classifier_kernel,
        out_shape=jax.ShapeDtypeStruct((B, C), jnp.float32),
        in_specs=[pl.BlockSpec(memory_space=pltpu.MemorySpace.VMEM)] * 5,
        out_specs=pl.BlockSpec(memory_space=pltpu.MemorySpace.VMEM),
    )(x, w1, b1, w2, b2)


# ------------------------------ parameters ------------------------------

def init_params(key, cfg):
    H, I, C = cfg["hidden"], cfg["intermediate"], cfg["num_classes"]
    bf16, f32 = jnp.bfloat16, jnp.float32

    def nrm(k, shape, dtype=bf16):
        return (0.02 * jax.random.normal(k, shape, jnp.float32)).astype(dtype)

    n_keys = 5 + 5 * cfg["n_layers"]
    keys = iter(jax.random.split(key, n_keys))

    params = {
        "word_emb": nrm(next(keys), (cfg["vocab_size"], H), f32),
        "pos_emb": nrm(next(keys), (cfg["max_pos"], H), f32),
        "type_emb": nrm(next(keys), (cfg["type_vocab"], H), f32),
        "emb_ln_g": jnp.ones((1, H), f32),
        "emb_ln_b": jnp.zeros((1, H), f32),
        "layers": [],
        # classifier: Linear(H,H) -> Dropout -> Linear(H, NUM_CLASSES)
        "cls_w1": nrm(next(keys), (H, H)),
        "cls_b1": jnp.zeros((1, H), f32),
        "cls_w2": nrm(next(keys), (H, C)),
        "cls_b2": jnp.zeros((1, C), f32),
    }
    for _ in range(cfg["n_layers"]):
        params["layers"].append({
            # fused Q|K|V projection weight: one (H, 3H) GEMM instead of three
            "w_qkv": nrm(next(keys), (H, 3 * H)),
            "b_qkv": jnp.zeros((1, 3 * H), f32),
            "wo": nrm(next(keys), (H, H)), "bo": jnp.zeros((1, H), f32),
            "ln1_g": jnp.ones((1, H), f32), "ln1_b": jnp.zeros((1, H), f32),
            "wi": nrm(next(keys), (H, I)), "bi": jnp.zeros((1, I), f32),
            "wo2": nrm(next(keys), (I, H)), "bo2": jnp.zeros((1, H), f32),
            "ln2_g": jnp.ones((1, H), f32), "ln2_b": jnp.zeros((1, H), f32),
        })
    return params


# ------------------------------ forward pass ------------------------------

def phobert_feedforward(params, input_ids, attn_mask, cfg):
    B, S = input_ids.shape
    H, NH = cfg["hidden"], cfg["n_heads"]
    Dh = H // NH
    eps = cfg["ln_eps"]
    pad = cfg["pad_id"]

    # --- RoBERTa embeddings (gathers stay in XLA; all dense math is Pallas) ---
    not_pad = (input_ids != pad).astype(jnp.int32)
    position_ids = jnp.cumsum(not_pad, axis=1) * not_pad + pad   # RoBERTa position ids
    token_type_ids = jnp.zeros_like(input_ids)
    emb = (jnp.take(params["word_emb"], input_ids, axis=0)
           + jnp.take(params["pos_emb"], position_ids, axis=0)
           + jnp.take(params["type_emb"], token_type_ids, axis=0))
    x = emb.reshape(B * S, H)
    h = layernorm(x, params["emb_ln_g"], params["emb_ln_b"], eps, jnp.bfloat16)

    # extended attention mask: (1 - mask) * dtype.min, shape (B, 1, 1, S)  (HF semantics)
    ext_mask = ((1.0 - attn_mask.astype(jnp.float32))[:, None, None, :]
                * jnp.finfo(jnp.float32).min)

    scale = 1.0 / math.sqrt(Dh)
    for lyr in params["layers"]:
        # --- self attention: fused QKV projection (reads h from HBM once) ---
        qkv = dense(h, lyr["w_qkv"], lyr["b_qkv"])                    # (B*S, 3H) bf16
        qkv = qkv.reshape(B, S, 3, NH, Dh).transpose(2, 0, 3, 1, 4)   # (3, B, NH, S, Dh)
        # TODO(synk): emit Q/K/V head-major directly from the GEMM out_spec once head_dim
        # is a lane-aligned multiple of 128 (removes this XLA transpose round trip).
        ctx = attention(qkv[0], qkv[1], qkv[2], ext_mask, scale)      # (B, NH, S, Dh)
        ctx = ctx.transpose(0, 2, 1, 3).reshape(B * S, H)
        # output projection + bias + residual + LayerNorm fused (dropout: eval identity)
        h = dense_residual_layernorm(ctx, lyr["wo"], lyr["bo"], h,
                                     lyr["ln1_g"], lyr["ln1_b"], eps)
        # --- feed-forward ---
        inter = dense(h, lyr["wi"], lyr["bi"], activation="gelu")
        h = dense_residual_layernorm(inter, lyr["wo2"], lyr["bo2"], h,
                                     lyr["ln2_g"], lyr["ln2_b"], eps)

    # bert_feature[0][:, 0, :]  (CLS token of last_hidden_state)
    cls = h.reshape(B, S, H)[:, 0, :]

    # classifier: Linear -> Dropout(eval: identity) -> Linear, one tiny fused kernel
    # TODO(synk): training-mode dropout (train_config.DROP_OUT) would need an RNG stream.
    logits = classifier_head(cls, params["cls_w1"], params["cls_b1"],
                             params["cls_w2"], params["cls_b2"])
    return logits


# ------------------------------ driver ------------------------------

if __name__ == "__main__":
    # Scaled-down PhoBERT-large-shaped config (real: hidden=1024, 24 layers, 16 heads,
    # intermediate=4096, vocab=64001, NUM_CLASSES from train_config).
    cfg = dict(vocab_size=100, hidden=64, n_layers=2, n_heads=4, intermediate=256,
               max_pos=64, type_vocab=1, num_classes=3, pad_id=1, ln_eps=1e-5)

    key = jax.random.PRNGKey(0)
    pkey, dkey = jax.random.split(key)
    params = init_params(pkey, cfg)

    B, S = 2, 8
    input_ids = jax.random.randint(dkey, (B, S), 3, cfg["vocab_size"], dtype=jnp.int32)
    input_ids = input_ids.at[:, 0].set(0)                   # <s> (CLS) token
    input_ids = input_ids.at[1, S - 2:].set(cfg["pad_id"])  # pad tail of sequence 1
    attn_mask = (input_ids != cfg["pad_id"]).astype(jnp.int32)

    logits = phobert_feedforward(params, input_ids, attn_mask, cfg)
    logits = jax.block_until_ready(logits)

    assert logits.shape == (B, cfg["num_classes"]), logits.shape
    assert bool(jnp.all(jnp.isfinite(logits.astype(jnp.float32))))
    print("KERNEL_OK")
</pallas_src>

<mosaic_0001>
module attributes {stable_mosaic.version = 11 : i64} {
  func.func @_ln_kernel(%arg0: i32, %arg1: memref<16x64xf32, #tpu.memory_space<vmem>>, %arg2: memref<1x64xf32, #tpu.memory_space<vmem>>, %arg3: memref<1x64xf32, #tpu.memory_space<vmem>>, %arg4: memref<16x64xbf16, #tpu.memory_space<vmem>>) attributes {dimension_semantics = [#tpu.dimension_semantics<parallel>], iteration_bounds = array<i64: 1>, scalar_prefetch = 0 : i64, scratch_operands = 0 : i64, tpu.core_type = #tpu.core_type<tc>, window_params = [{transform_indices = @transform_0, window_bounds = array<i64: 16, 64>}, {pipeline_mode = #tpu.pipeline_mode<synchronous>, transform_indices = @transform_1, window_bounds = array<i64: 1, 64>}, {pipeline_mode = #tpu.pipeline_mode<synchronous>, transform_indices = @transform_2, window_bounds = array<i64: 1, 64>}, {transform_indices = @transform_3, window_bounds = array<i64: 16, 64>}]} {
    %c0 = arith.constant 0 : index
    %c0_0 = arith.constant 0 : index
    %0 = vector.load %arg1[%c0, %c0_0] : memref<16x64xf32, #tpu.memory_space<vmem>>, vector<16x64xf32>
    %cst = arith.constant dense<0.000000e+00> : vector<16xf32>
    %1 = vector.multi_reduction <add>, %0, %cst [1] : vector<16x64xf32> to vector<16xf32>
    %2 = vector.shape_cast %1 : vector<16xf32> to vector<16x1xf32>
    %cst_1 = arith.constant 6.400000e+01 : f32
    %3 = vector.broadcast %cst_1 : f32 to vector<16x1xf32>
    %4 = arith.divf %2, %3 : vector<16x1xf32>
    %5 = vector.broadcast %4 : vector<16x1xf32> to vector<16x64xf32>
    %6 = arith.subf %0, %5 : vector<16x64xf32>
    %7 = arith.mulf %6, %6 : vector<16x64xf32>
    %cst_2 = arith.constant dense<0.000000e+00> : vector<16xf32>
    %8 = vector.multi_reduction <add>, %7, %cst_2 [1] : vector<16x64xf32> to vector<16xf32>
    %9 = vector.shape_cast %8 : vector<16xf32> to vector<16x1xf32>
    %cst_3 = arith.constant 6.400000e+01 : f32
    %10 = vector.broadcast %cst_3 : f32 to vector<16x1xf32>
    %11 = arith.divf %9, %10 : vector<16x1xf32>
    %12 = vector.broadcast %4 : vector<16x1xf32> to vector<16x64xf32>
    %13 = arith.subf %0, %12 : vector<16x64xf32>
    %cst_4 = arith.constant 9.99999974E-6 : f32
    %14 = vector.broadcast %cst_4 : f32 to vector<16x1xf32>
    %15 = arith.addf %11, %14 : vector<16x1xf32>
    %16 = math.rsqrt %15 : vector<16x1xf32>
    %17 = vector.broadcast %16 : vector<16x1xf32> to vector<16x64xf32>
    %18 = arith.mulf %13, %17 : vector<16x64xf32>
    %c0_5 = arith.constant 0 : index
    %c0_6 = arith.constant 0 : index
    %19 = vector.load %arg2[%c0_5, %c0_6] : memref<1x64xf32, #tpu.memory_space<vmem>>, vector<1x64xf32>
    %20 = vector.broadcast %19 : vector<1x64xf32> to vector<16x64xf32>
    %21 = arith.mulf %18, %20 : vector<16x64xf32>
    %c0_7 = arith.constant 0 : index
    %c0_8 = arith.constant 0 : index
    %22 = vector.load %arg3[%c0_7, %c0_8] : memref<1x64xf32, #tpu.memory_space<vmem>>, vector<1x64xf32>
    %23 = vector.broadcast %22 : vector<1x64xf32> to vector<16x64xf32>
    %24 = arith.addf %21, %23 : vector<16x64xf32>
    %25 = arith.truncf %24 : vector<16x64xf32> to vector<16x64xbf16>
    %c0_9 = arith.constant 0 : index
    %c0_10 = arith.constant 0 : index
    %26 = vector.load %arg4[%c0_9, %c0_10] : memref<16x64xbf16, #tpu.memory_space<vmem>>, vector<16x64xbf16>
    tpu.vector_store %arg4[%c0_9, %c0_10], %25 {strides = array<i32>} : memref<16x64xbf16, #tpu.memory_space<vmem>>, vector<16x64xbf16>,
    return
  }
  func.func @transform_0(%arg0: i32) -> (i32, i32) {
    %c0_i32 = arith.constant 0 : i32
    %c0_i32_0 = arith.constant 0 : i32
    return %arg0, %c0_i32 : i32, i32
  }
  func.func @transform_1(%arg0: i32) -> (i32, i32) {
    %c0_i32 = arith.constant 0 : i32
    %c0_i32_0 = arith.constant 0 : i32
    %c0_i32_1 = arith.constant 0 : i32
    return %c0_i32, %c0_i32_0 : i32, i32
  }
  func.func @transform_2(%arg0: i32) -> (i32, i32) {
    %c0_i32 = arith.constant 0 : i32
    %c0_i32_0 = arith.constant 0 : i32
    %c0_i32_1 = arith.constant 0 : i32
    return %c0_i32, %c0_i32_0 : i32, i32
  }
  func.func @transform_3(%arg0: i32) -> (i32, i32) {
    %c0_i32 = arith.constant 0 : i32
    %c0_i32_0 = arith.constant 0 : i32
    return %arg0, %c0_i32 : i32, i32
  }
}

</mosaic_0001>

<bundles_post_ra>
// kernel: tpu_custom_call.1
= control target key start
LH: loop header
LB: loop body
LE: loop exit
PB: predicated region body
PF: predicated region fallthrough
CT: control target
= control target key end

     0   :  { %8 = vsyncpa [#allocation3], 0  ;;  %s207_s0 = inlined_call_operand.hbm [shape: f32[16,64], index: 0, kind: input, shape index: {}]   ;;  %s208_s1 = inlined_call_operand.vmem [shape: f32[1,64], index: 1, kind: input, shape index: {}]   ;;  %s209_s2 = inlined_call_operand.vmem [shape: f32[1,64], index: 2, kind: input, shape index: {}]   ;;  %s210_s3 = inlined_call_operand.hbm [shape: bf16[16,64], index: 3, kind: output, shape index: {}]  }
   0x1   :  { %9 = vsyncpa [#allocation4], 0  ;;  %s165_s12 = smov [#allocation2]  }
   0x2   :  { %s15_s13 = sshll.u32 %s165_s12, 4  ;;  %s16_s13 = int_to_ptr.vmem [resolvable:$true] %s15_s13 }
   0x3   :  { %s129_s14 = scalar_lea.vmem %s16_s13, 256  ;;  %p134_p1 = scmp.lt.s32.totalorder %s16_s13, %s16_s13 }
   0x4   :  { %p130_p0 = scmp.ne.s32.totalorder %s16_s13, %s129_s14  ;;  %p135_p2 = scmp.lt.s32.totalorder %s129_s14, %s129_s14 }
   0x6   :  { %p136_p3 = por %p135_p2, %p134_p1 }
   0x8   :  { %p137_p4 = pnand %p136_p3, %p130_p0 }
   0xa   :  { %140 = shalt.err (!%p137_p4)
}
   0xb   :  { %s166_s15 = smov 128   ;;  %s167_s16 = smov 8  }
   0xc   :  { %21 = dma.hbm_to_vmem [thread:$0]  %s207_s0, 256, %s16_s13, [#allocation3], %s166_s15, %s166_s15, %s167_s16  }
   0xd   :  { %161 = dma.done.wait [#allocation3], 256  }
   0xe   :  { %162 = vsyncadd [#allocation3], 4294967040  ;;  %vm31_vm0 = vcmask 523264   ;;  %v29_v0 = vld [vmem:[#allocation2] sm:$0xff]  ;;  %v30_v1 = vld [vmem:[#allocation2 + $0x8] sm:$0xff]  ;;  %vm85_vm1 = vcmask 519168  }
   0xf   :  { %v32_v2 = vsel %vm31_vm0, %v29_v0, 0.0  ;;  %v35_v3 = vsel %vm31_vm0, %v30_v1, 0.0  ;;  %v105_v21 = vld [vmem:[%s208_s1] ss:$0 sm:$0xff]  ;;  %s168_s22 = smov [#allocation5]  }
  0x10   :  { %33 = vadd.xlane.f32.xlu0 %v32_v2  ;;  %v106_v23 = vld [vmem:[%s209_s2] ss:$0 sm:$0xff]  ;;  %s93_s23 = sshll.u32 %s168_s22, 4  ;;  %s94_s23 = int_to_ptr.vmem [resolvable:$true] %s93_s23 }
  0x11   :  { %s141_s1 = scalar_lea.vmem %s94_s23, 128  ;;  %p146_p6 = scmp.lt.s32.totalorder %s94_s23, %s94_s23 }
  0x12   :  { %p142_p5 = scmp.ne.s32.totalorder %s94_s23, %s141_s1  ;;  %p147_p7 = scmp.lt.s32.totalorder %s141_s1, %s141_s1 }
  0x14   :  { %36 = vadd.xlane.f32.xlu0 %v35_v3  ;;  %p148_p8 = por %p147_p7, %p146_p6 }
  0x16   :  { %p149_p9 = pnand %p148_p8, %p142_p5 }
  0x99   :  { %v34_v4 = vpop.xlane.xlu0 %33 }
  0x9a   :  { %v39_v5 = vmul.f32 0.015625, %v34_v4 }
  0x9c   :  { %v41_v6 = vsub.f32 %v29_v0, %v39_v5 }
  0x9d   :  { %v37_v7 = vpop.xlane.xlu0 %36 }
  0x9e   :  { %v40_v8 = vmul.f32 0.015625, %v37_v7  ;;  %v43_v9 = vmul.f32 %v41_v6, %v41_v6 }
  0xa0   :  { %v42_v10 = vsub.f32 %v30_v1, %v40_v8  ;;  %v45_v11 = vsel %vm31_vm0, %v43_v9, 0.0 }
  0xa1   :  { %46 = vadd.xlane.f32.xlu1 %v45_v11 }
  0xa2   :  { %v44_v12 = vmul.f32 %v42_v10, %v42_v10 }
  0xa4   :  { %v48_v13 = vsel %vm31_vm0, %v44_v12, 0.0 }
  0xa5   :  { %49 = vadd.xlane.f32.xlu1 %v48_v13 }
 0x12a   :  { %v47_v14 = vpop.xlane.xlu1 %46 }
 0x12b   :  { %v51_v15 = vmul.f32 0.015625, %v47_v14 }
 0x12d   :  { %v53_v16 = vadd.f32 1e-05, %v51_v15 }
 0x12e   :  { %v50_v17 = vpop.xlane.xlu1 %49 }
 0x12f   :  { %117 = vrsqrt.f32 %v53_v16  ;;  %v52_v18 = vmul.f32 0.015625, %v50_v17 }
 0x131   :  { %v54_v19 = vadd.f32 1e-05, %v52_v18 }
 0x133   :  { %119 = vrsqrt.f32 %v54_v19 }
 0x13c   :  { %v118_v20 = vpop.eup %117 }
 0x13d   :  { %v57_v22 = vmul.f32 %v118_v20, %v41_v6 }
 0x13f   :  { %v66_v24 = vmul.f32 %v105_v21, %v57_v22 }
 0x140   :  { %v120_v25 = vpop.eup %119 }
 0x141   :  { %v58_v26 = vmul.f32 %v120_v25, %v42_v10  ;;  %v75_v27 = vadd.f32 %v106_v23, %v66_v24 }
 0x143   :  { %v67_v28 = vmul.f32 %v105_v21, %v58_v26  ;;  %v109_v29 = vpack.c.bf16 %v75_v27, %v75_v27 }
 0x145   :  { %v76_v30 = vadd.f32 %v106_v23, %v67_v28  ;;  %86 = vst.msk [vmem:[#allocation5] sm:$0xf] %vm85_vm1, %v109_v29 }
 0x147   :  { %v110_v31 = vpack.c.bf16 %v76_v30, %v76_v30 }
 0x149   :  { %87 = vst.msk [vmem:[#allocation5 + $0x4] sm:$0xf] %vm85_vm1, %v110_v31 }
 0x14a   :  { %152 = shalt.err (!%p149_p9)
}
 0x14b   :  { %s169_s2 = smov 64   ;;  %s170_s24 = smov 4  }
 0x14c   :  { %99 = dma.vmem_to_hbm [thread:$0]  %s94_s23, 128, %s210_s3, [#allocation4], %s169_s2, %s169_s2, %s170_s24  }
 0x14d   :  { %163 = dma.done.wait [#allocation4], 128  }
 0x14e   :  { %164 = vsyncadd [#allocation4], 4294967168 }
 0x14f   :  { %103 = vsyncpa [#allocation3], 1 }
 0x150   :  { %104 = vsyncpa [#allocation4], 1 }

</bundles_post_ra>
